<compile_context>
chip_gen: v7x
topology: tpu7x:2x2x1
jax: 0.10.0
libtpu: 0.0.40
codegen_flags: <defaults>
</compile_context>

<pallas_src>
import functools
import math

import jax
import jax.numpy as jnp
from jax.experimental import pallas as pl
from jax.experimental.pallas import tpu as pltpu

SIGMA = 3.0

_BLOCK_TARGET_BYTES = 2 * 1024 * 1024  # ~2 MiB f32 per operand block


def _weak_gaussian_ll_kernel(var_pred_ref, mean_pred_ref, var_ref, mean_ref,
                             out_ref, *, sigma):
    # Upcast inside the kernel so HBM traffic stays at the input dtype width.
    vp = var_pred_ref[...].astype(jnp.float32)
    v = var_ref[...].astype(jnp.float32)
    diff = jnp.abs(mean_ref[...].astype(jnp.float32)
                   - mean_pred_ref[...].astype(jnp.float32))

    threshold = sigma * jnp.sqrt(vp)                 # EUP push 1: sqrt
    thr_sq = (sigma * sigma) * vp                    # VPU; avoids thr*thr after sqrt
    vloss = jnp.where(diff < threshold,
                      diff * diff,
                      2.0 * threshold * diff - thr_sq)

    # Single EUP reciprocal push; Newton refinement runs on the 4-wide VALU
    # (has slack here), restoring ~f32 precision for the division and log.
    r = pl.reciprocal(vp, approx=True)               # EUP push 2: rcp
    r = r * (2.0 - vp * r)                           # VPU Newton step 1
    r = r * (2.0 - vp * r)                           # VPU Newton step 2 (to f32 eps)

    # log(vp) - log(v) == -log(v * (1/vp)); reuses r for the division term.
    # Assumes var/var_pred ratios stay within f32 range (true for real data).
    out = (v + vloss) * r - jnp.log(v * r) - 1.0     # EUP push 3: log
    out_ref[...] = out.astype(out_ref.dtype)


def weak_gaussian_ll(var_pred, mean_pred, var, mean, *, sigma=SIGMA):
    """Pallas TPU implementation of WeakGaussianLL.forward."""
    orig_shape = var_pred.shape
    assert mean_pred.shape == orig_shape
    assert var.shape == orig_shape
    assert mean.shape == orig_shape

    out_dtype = jnp.result_type(var_pred.dtype, mean_pred.dtype,
                                var.dtype, mean.dtype)
    total = math.prod(orig_shape)

    # --- choose a zero-copy view + block shape ---------------------------
    lanes = next((l for l in (1024, 512, 256, 128) if total % l == 0), None)

    if lanes is not None:
        # Lane-dense 2-D view (rows, lanes); reshape is a zero-cost bitcast.
        rows = total // lanes
        target_rows = max(8, _BLOCK_TARGET_BYTES // (lanes * 4))
        if rows <= 8:
            blk_rows = rows                       # full extent; tiny tensor
        else:
            # >= ~8 grid steps so the software pipeline and both v7x TCs
            # have work, but never larger than the ~2 MiB target block.
            blk_rows = min(target_rows, pl.cdiv(rows, 8))
            blk_rows = max(8, (blk_rows // 8) * 8)
        grid = (pl.cdiv(rows, blk_rows),)
        arr_shape = (rows, lanes)
        block_shape = (blk_rows, lanes)
        index_map = lambda i: (i, 0)
        block_elems = blk_rows * lanes
    else:
        # Ragged element count: stay flat and unpadded; Pallas masks the
        # non-dividing last block (padded reads are discarded on write).
        if total <= 8192:
            blk = total                           # full extent, single step
        else:
            blk = min(_BLOCK_TARGET_BYTES // 4, pl.cdiv(total, 8))
            blk = max(1024, (blk // 1024) * 1024)
        grid = (pl.cdiv(total, blk),)
        arr_shape = (total,)
        block_shape = (blk,)
        index_map = lambda i: (i,)
        block_elems = blk

    args = tuple(x.reshape(arr_shape) for x in (var_pred, mean_pred, var, mean))
    spec = pl.BlockSpec(block_shape, index_map)

    # 5 streams x 2 pipeline buffers + f32 upcast temporaries inside the
    # kernel: ~16x one f32 block, capped at 48 MiB so it fits v7x's 64 MiB.
    block_bytes = block_elems * 4
    vmem_limit = int(min(48 * 1024 * 1024,
                         max(16 * block_bytes, 16 * 1024 * 1024)))

    in_bytes = sum(int(x.size) * x.dtype.itemsize for x in args)
    out_bytes = total * jnp.dtype(out_dtype).itemsize
    cost = pl.CostEstimate(flops=12 * total,
                           transcendentals=3 * total,
                           bytes_accessed=in_bytes + out_bytes)

    out = pl.pallas_call(
        functools.partial(_weak_gaussian_ll_kernel, sigma=float(sigma)),
        out_shape=jax.ShapeDtypeStruct(arr_shape, out_dtype),
        grid_spec=pltpu.PrefetchScalarGridSpec(
            num_scalar_prefetch=0,
            grid=grid,
            in_specs=[spec, spec, spec, spec],
            out_specs=spec,
        ),
        compiler_params=pltpu.CompilerParams(
            dimension_semantics=("parallel",),   # shards the stream across TCs
            vmem_limit_bytes=vmem_limit,
        ),
        cost_estimate=cost,
    )(*args)

    return out.reshape(orig_shape)


def _reference(var_pred, mean_pred, var, mean, sigma=SIGMA):
    diff = jnp.abs(mean - mean_pred)
    threshold = sigma * jnp.sqrt(var_pred)
    vloss = jnp.where(diff < threshold, diff ** 2,
                      2 * threshold * diff - threshold ** 2)
    return jnp.log(var_pred) + (var + vloss) / var_pred - jnp.log(var) - 1.0


def _make_inputs(key, shape):
    k1, k2, k3, k4 = jax.random.split(key, 4)
    var_pred = jax.random.uniform(k1, shape, jnp.float32, minval=0.1, maxval=2.0)
    var = jax.random.uniform(k2, shape, jnp.float32, minval=0.1, maxval=2.0)
    mean_pred = jax.random.normal(k3, shape, jnp.float32)
    mean = jax.random.normal(k4, shape, jnp.float32)
    return var_pred, mean_pred, var, mean


if __name__ == "__main__":
    key = jax.random.PRNGKey(0)

    # Primary check: NCHW shape consistent with the module (single-step grid).
    shape = (2, 4, 16, 16)
    var_pred, mean_pred, var, mean = _make_inputs(key, shape)
    out = weak_gaussian_ll(var_pred, mean_pred, var, mean)
    out = jax.block_until_ready(out)
    ref = _reference(var_pred, mean_pred, var, mean)
    assert out.shape == shape and out.dtype == jnp.float32
    assert jnp.allclose(out, ref, atol=1e-5, rtol=1e-5), "mismatch vs reference"

    # Secondary check: exercises a multi-step pipelined grid (rows=32, grid=4).
    shape2 = (2, 16, 32, 32)
    var_pred2, mean_pred2, var2, mean2 = _make_inputs(jax.random.PRNGKey(1), shape2)
    out2 = weak_gaussian_ll(var_pred2, mean_pred2, var2, mean2)
    out2 = jax.block_until_ready(out2)
    ref2 = _reference(var_pred2, mean_pred2, var2, mean2)
    assert out2.shape == shape2
    assert jnp.allclose(out2, ref2, atol=1e-5, rtol=1e-5), "mismatch vs reference (multi-block)"

    print("KERNEL_OK")
</pallas_src>

<mosaic_0001>
module attributes {stable_mosaic.version = 11 : i64} {
  func.func @_weak_gaussian_ll_kernel(%arg0: i32, %arg1: memref<2x1024xf32, #tpu.memory_space<vmem>>, %arg2: memref<2x1024xf32, #tpu.memory_space<vmem>>, %arg3: memref<2x1024xf32, #tpu.memory_space<vmem>>, %arg4: memref<2x1024xf32, #tpu.memory_space<vmem>>, %arg5: memref<2x1024xf32, #tpu.memory_space<vmem>>) attributes {dimension_semantics = [#tpu.dimension_semantics<parallel>], iteration_bounds = array<i64: 1>, scalar_prefetch = 0 : i64, scratch_operands = 0 : i64, tpu.core_type = #tpu.core_type<tc>, window_params = [{transform_indices = @transform_0, window_bounds = array<i64: 2, 1024>}, {transform_indices = @transform_1, window_bounds = array<i64: 2, 1024>}, {transform_indices = @transform_2, window_bounds = array<i64: 2, 1024>}, {transform_indices = @transform_3, window_bounds = array<i64: 2, 1024>}, {transform_indices = @transform_4, window_bounds = array<i64: 2, 1024>}]} {
    %c0 = arith.constant 0 : index
    %c0_0 = arith.constant 0 : index
    %0 = vector.load %arg1[%c0, %c0_0] : memref<2x1024xf32, #tpu.memory_space<vmem>>, vector<2x1024xf32>
    %c0_1 = arith.constant 0 : index
    %c0_2 = arith.constant 0 : index
    %1 = vector.load %arg3[%c0_1, %c0_2] : memref<2x1024xf32, #tpu.memory_space<vmem>>, vector<2x1024xf32>
    %c0_3 = arith.constant 0 : index
    %c0_4 = arith.constant 0 : index
    %2 = vector.load %arg4[%c0_3, %c0_4] : memref<2x1024xf32, #tpu.memory_space<vmem>>, vector<2x1024xf32>
    %c0_5 = arith.constant 0 : index
    %c0_6 = arith.constant 0 : index
    %3 = vector.load %arg2[%c0_5, %c0_6] : memref<2x1024xf32, #tpu.memory_space<vmem>>, vector<2x1024xf32>
    %4 = arith.subf %2, %3 : vector<2x1024xf32>
    %5 = math.absf %4 : vector<2x1024xf32>
    %6 = math.sqrt %0 : vector<2x1024xf32>
    %cst = arith.constant 3.000000e+00 : f32
    %7 = vector.broadcast %cst : f32 to vector<2x1024xf32>
    %8 = arith.mulf %7, %6 : vector<2x1024xf32>
    %cst_7 = arith.constant 9.000000e+00 : f32
    %9 = vector.broadcast %cst_7 : f32 to vector<2x1024xf32>
    %10 = arith.mulf %9, %0 : vector<2x1024xf32>
    %11 = arith.cmpf olt, %5, %8 : vector<2x1024xf32>
    %12 = arith.mulf %5, %5 : vector<2x1024xf32>
    %cst_8 = arith.constant 2.000000e+00 : f32
    %13 = vector.broadcast %cst_8 : f32 to vector<2x1024xf32>
    %14 = arith.mulf %13, %8 : vector<2x1024xf32>
    %15 = arith.mulf %14, %5 : vector<2x1024xf32>
    %16 = arith.subf %15, %10 : vector<2x1024xf32>
    %17 = arith.select %11, %12, %16 : vector<2x1024xi1>, vector<2x1024xf32>
    %18 = tpu.reciprocal %0 {approx = true} : vector<2x1024xf32> -> vector<2x1024xf32>
    %19 = arith.mulf %0, %18 : vector<2x1024xf32>
    %cst_9 = arith.constant 2.000000e+00 : f32
    %20 = vector.broadcast %cst_9 : f32 to vector<2x1024xf32>
    %21 = arith.subf %20, %19 : vector<2x1024xf32>
    %22 = arith.mulf %18, %21 : vector<2x1024xf32>
    %23 = arith.mulf %0, %22 : vector<2x1024xf32>
    %cst_10 = arith.constant 2.000000e+00 : f32
    %24 = vector.broadcast %cst_10 : f32 to vector<2x1024xf32>
    %25 = arith.subf %24, %23 : vector<2x1024xf32>
    %26 = arith.mulf %22, %25 : vector<2x1024xf32>
    %27 = arith.addf %1, %17 : vector<2x1024xf32>
    %28 = arith.mulf %27, %26 : vector<2x1024xf32>
    %29 = arith.mulf %1, %26 : vector<2x1024xf32>
    %30 = math.log %29 : vector<2x1024xf32>
    %31 = arith.subf %28, %30 : vector<2x1024xf32>
    %cst_11 = arith.constant 1.000000e+00 : f32
    %32 = vector.broadcast %cst_11 : f32 to vector<2x1024xf32>
    %33 = arith.subf %31, %32 : vector<2x1024xf32>
    %c0_12 = arith.constant 0 : index
    %c0_13 = arith.constant 0 : index
    %34 = vector.load %arg5[%c0_12, %c0_13] : memref<2x1024xf32, #tpu.memory_space<vmem>>, vector<2x1024xf32>
    tpu.vector_store %arg5[%c0_12, %c0_13], %33 {strides = array<i32>} : memref<2x1024xf32, #tpu.memory_space<vmem>>, vector<2x1024xf32>,
    return
  }
  func.func @transform_0(%arg0: i32) -> (i32, i32) {
    %c0_i32 = arith.constant 0 : i32
    %c0_i32_0 = arith.constant 0 : i32
    return %arg0, %c0_i32 : i32, i32
  }
  func.func @transform_1(%arg0: i32) -> (i32, i32) {
    %c0_i32 = arith.constant 0 : i32
    %c0_i32_0 = arith.constant 0 : i32
    return %arg0, %c0_i32 : i32, i32
  }
  func.func @transform_2(%arg0: i32) -> (i32, i32) {
    %c0_i32 = arith.constant 0 : i32
    %c0_i32_0 = arith.constant 0 : i32
    return %arg0, %c0_i32 : i32, i32
  }
  func.func @transform_3(%arg0: i32) -> (i32, i32) {
    %c0_i32 = arith.constant 0 : i32
    %c0_i32_0 = arith.constant 0 : i32
    return %arg0, %c0_i32 : i32, i32
  }
  func.func @transform_4(%arg0: i32) -> (i32, i32) {
    %c0_i32 = arith.constant 0 : i32
    %c0_i32_0 = arith.constant 0 : i32
    return %arg0, %c0_i32 : i32, i32
  }
}

</mosaic_0001>

<bundles_post_ra>
// kernel: tpu_custom_call.1
= control target key start
LH: loop header
LB: loop body
LE: loop exit
PB: predicated region body
PF: predicated region fallthrough
CT: control target
= control target key end

     0   :  { %9 = vsyncpa [#allocation3], 0  ;;  %s381_s0 = inlined_call_operand.hbm [shape: f32[2,1024], index: 0, kind: input, shape index: {}]   ;;  %s382_s1 = inlined_call_operand.hbm [shape: f32[2,1024], index: 1, kind: input, shape index: {}]   ;;  %s383_s2 = inlined_call_operand.hbm [shape: f32[2,1024], index: 2, kind: input, shape index: {}]   ;;  %s384_s3 = inlined_call_operand.hbm [shape: f32[2,1024], index: 3, kind: input, shape index: {}]   ;;  %s385_s4 = inlined_call_operand.hbm [shape: f32[2,1024], index: 4, kind: output, shape index: {}]  }
   0x1   :  { %10 = vsyncpa [#allocation6], 0 }
   0x2   :  { %11 = vsyncpa [#allocation9], 0 }
   0x3   :  { %12 = vsyncpa [#allocation4], 0  ;;  %s291_s15 = smov [#allocation5]   ;;  %s292_s17 = smov [#allocation2]  }
   0x4   :  { %s29_s16 = sshll.u32 %s291_s15, 4  ;;  %s19_s18 = sshll.u32 %s292_s17, 4  ;;  %s30_s16 = int_to_ptr.vmem [resolvable:$true] %s29_s16  ;;  %s20_s18 = int_to_ptr.vmem [resolvable:$true] %s19_s18 }
   0x5   :  { %s173_s21 = scalar_lea.hbm %s382_s1, 256 }
   0x6   :  { %p174_p0 = scmp.ne.s32.totalorder %s382_s1, %s173_s21  ;;  %p177_p1 = scmp.lt.u32.totalorder %s173_s21, %s382_s1 }
   0x8   :  { %p179_p2 = pnand %p177_p1, %p174_p0 }
   0xa   :  { %182 = shalt.err (!%p179_p2)
}
   0xb   :  { %s183_s26 = scalar_lea.vmem %s30_s16, 256  ;;  %p188_p4 = scmp.lt.s32.totalorder %s30_s16, %s30_s16 }
   0xc   :  { %p184_p3 = scmp.ne.s32.totalorder %s30_s16, %s183_s26  ;;  %p189_p5 = scmp.lt.s32.totalorder %s183_s26, %s183_s26 }
   0xe   :  { %p190_p6 = por %p189_p5, %p188_p4 }
  0x10   :  { %p191_p7 = pnand %p190_p6, %p184_p3 }
  0x12   :  { %194 = shalt.err (!%p191_p7)
}
  0x13   :  { %32 = dma.hbm_to_vmem [thread:$0]  %s382_s1, 256, %s30_s16, [#allocation6]  }
  0x14   :  { %s195_s5 = scalar_lea.hbm %s381_s0, 256 }
  0x15   :  { %p196_p8 = scmp.ne.s32.totalorder %s381_s0, %s195_s5  ;;  %p199_p9 = scmp.lt.u32.totalorder %s195_s5, %s381_s0 }
  0x17   :  { %p201_p10 = pnand %p199_p9, %p196_p8 }
  0x19   :  { %204 = shalt.err (!%p201_p10)
}
  0x1a   :  { %s205_s10 = scalar_lea.vmem %s20_s18, 256  ;;  %p210_p12 = scmp.lt.s32.totalorder %s20_s18, %s20_s18 }
  0x1b   :  { %p206_p11 = scmp.ne.s32.totalorder %s20_s18, %s205_s10  ;;  %p211_p13 = scmp.lt.s32.totalorder %s205_s10, %s205_s10 }
  0x1d   :  { %p212_p0 = por %p211_p13, %p210_p12 }
  0x1f   :  { %p213_p1 = pnand %p212_p0, %p206_p11 }
  0x21   :  { %216 = shalt.err (!%p213_p1)
}
  0x22   :  { %22 = dma.hbm_to_vmem [thread:$0]  %s381_s0, 256, %s20_s18, [#allocation3]  }
  0x23   :  { %s293_s12 = smov [#allocation7]   ;;  %s294_s14 = smov [#allocation8]  }
  0x24   :  { %s39_s13 = sshll.u32 %s293_s12, 4  ;;  %s49_s15 = sshll.u32 %s294_s14, 4  ;;  %s40_s13 = int_to_ptr.vmem [resolvable:$true] %s39_s13  ;;  %s50_s15 = int_to_ptr.vmem [resolvable:$true] %s49_s15 }
  0x25   :  { %s217_s19 = scalar_lea.hbm %s383_s2, 256 }
  0x26   :  { %p218_p2 = scmp.ne.s32.totalorder %s383_s2, %s217_s19  ;;  %p221_p3 = scmp.lt.u32.totalorder %s217_s19, %s383_s2 }
  0x28   :  { %p223_p4 = pnand %p221_p3, %p218_p2 }
  0x2a   :  { %226 = shalt.err (!%p223_p4)
}
  0x2b   :  { %s227_s0 = scalar_lea.vmem %s40_s13, 256  ;;  %p232_p6 = scmp.lt.s32.totalorder %s40_s13, %s40_s13 }
  0x2c   :  { %p228_p5 = scmp.ne.s32.totalorder %s40_s13, %s227_s0  ;;  %p233_p7 = scmp.lt.s32.totalorder %s227_s0, %s227_s0 }
  0x2e   :  { %p234_p8 = por %p233_p7, %p232_p6 }
  0x30   :  { %p235_p9 = pnand %p234_p8, %p228_p5 }
  0x32   :  { %238 = shalt.err (!%p235_p9)
}
  0x33   :  { %42 = dma.hbm_to_vmem [thread:$0]  %s383_s2, 256, %s40_s13, [#allocation6]  }
  0x34   :  { %s239_s27 = scalar_lea.hbm %s384_s3, 256 }
  0x35   :  { %p240_p10 = scmp.ne.s32.totalorder %s384_s3, %s239_s27  ;;  %p243_p11 = scmp.lt.u32.totalorder %s239_s27, %s384_s3 }
  0x37   :  { %p245_p12 = pnand %p243_p11, %p240_p10 }
  0x39   :  { %248 = shalt.err (!%p245_p12)
}
  0x3a   :  { %s249_s6 = scalar_lea.vmem %s50_s15, 256  ;;  %p254_p0 = scmp.lt.s32.totalorder %s50_s15, %s50_s15 }
  0x3b   :  { %p250_p13 = scmp.ne.s32.totalorder %s50_s15, %s249_s6  ;;  %p255_p1 = scmp.lt.s32.totalorder %s249_s6, %s249_s6 }
  0x3d   :  { %p256_p2 = por %p255_p1, %p254_p0 }
  0x3f   :  { %p257_p3 = pnand %p256_p2, %p250_p13 }
  0x41   :  { %260 = shalt.err (!%p257_p3)
}
  0x42   :  { %52 = dma.hbm_to_vmem [thread:$0]  %s384_s3, 256, %s50_s15, [#allocation9]  }
  0x43   :  { %283 = dma.done.wait [#allocation3], 256  }
  0x44   :  { %284 = vsyncadd [#allocation3], 4294967040 }
  0x45   :  { %285 = dma.done.wait [#allocation6], 512  }
  0x46   :  { %286 = vsyncadd [#allocation6], 4294966784 }
  0x47   :  { %287 = dma.done.wait [#allocation9], 256  }
  0x48   :  { %288 = vsyncadd [#allocation9], 4294967040  ;;  %v65_v0 = vld [vmem:[#allocation2] sm:$0xff]  ;;  %v66_v1 = vld [vmem:[#allocation2 + $0x8] sm:$0xff]  ;;  %s295_s3 = smov [#allocation10]  }
  0x49   :  { %161 = vrsqrt.f32 %v65_v0  ;;  %v69_v2 = vld [vmem:[#allocation8] sm:$0xff]  ;;  %vm79_vm0 = vcmp.eq.f32.partialorder %v65_v0, inf  ;;  %v82_v5 = vand.u32 2147483648, %v65_v0  ;;  %vm81_vm1 = vcmp.eq.f32.partialorder %v65_v0, 0.0  ;;  %v70_v8 = vld [vmem:[#allocation8 + $0x8] sm:$0xff]  ;;  %v67_v37 = vld [vmem:[#allocation7] sm:$0xff] }
  0x4a   :  { %163 = vrcp.f32 %v65_v0  ;;  %v71_v3 = vld [vmem:[#allocation5] sm:$0xff]  ;;  %v72_v9 = vld [vmem:[#allocation5 + $0x8] sm:$0xff]  ;;  %vm86_vm2 = vcmp.eq.f32.partialorder %v66_v1, inf  ;;  %v89_v13 = vand.u32 2147483648, %v66_v1  ;;  %vm88_vm3 = vcmp.eq.f32.partialorder %v66_v1, 0.0  ;;  %v68_v42 = vld [vmem:[#allocation7 + $0x8] sm:$0xff] }
  0x4b   :  { %165 = vrsqrt.f32 %v66_v1  ;;  %v73_v11 = vsub.f32 %v69_v2, %v71_v3  ;;  %v74_v19 = vsub.f32 %v70_v8, %v72_v9  ;;  %v93_v33 = vmul.f32 9.0, %v65_v0  ;;  %s143_s8 = sshll.u32 %s295_s3, 4  ;;  %s144_s8 = int_to_ptr.vmem [resolvable:$true] %s143_s8 }
  0x4c   :  { %167 = vrcp.f32 %v66_v1  ;;  %v94_v39 = vmul.f32 9.0, %v66_v1  ;;  %s261_s9 = scalar_lea.vmem %s144_s8, 256  ;;  %p266_p5 = scmp.lt.s32.totalorder %s144_s8, %s144_s8 }
  0x4d   :  { %v75_v23 = vand.u32 2147483647, %v73_v11  ;;  %v76_v30 = vand.u32 2147483647, %v74_v19  ;;  %p262_p4 = scmp.ne.s32.totalorder %s144_s8, %s261_s9  ;;  %p267_p6 = scmp.lt.s32.totalorder %s261_s9, %s261_s9 }
  0x4f   :  { %v97_v43 = vmul.f32 %v75_v23, %v75_v23  ;;  %v98_v47 = vmul.f32 %v76_v30, %v76_v30  ;;  %p268_p7 = por %p267_p6, %p266_p5 }
  0x51   :  { %p269_p8 = pnand %p268_p7, %p262_p4 }
  0x53   :  { %v162_v4 = vpop.eup %161 }
  0x54   :  { %v164_v6 = vpop.eup %163  ;;  %v78_v7 = vmul.f32 %v162_v4, %v65_v0 }
  0x55   :  { %v166_v10 = vpop.eup %165  ;;  %v109_v12 = vmul.f32 %v164_v6, %v65_v0 }
  0x56   :  { %v168_v14 = vpop.eup %167  ;;  %v80_v15 = vsel %vm79_vm0, %v65_v0, %v78_v7  ;;  %v85_v16 = vmul.f32 %v166_v10, %v66_v1 }
  0x57   :  { %v83_v17 = vsel %vm81_vm1, %v82_v5, %v80_v15  ;;  %v111_v18 = vsub.f32 2.0, %v109_v12  ;;  %v110_v20 = vmul.f32 %v168_v14, %v66_v1 }
  0x58   :  { %v91_v21 = vmul.f32 3.0, %v83_v17  ;;  %v87_v22 = vsel %vm86_vm2, %v66_v1, %v85_v16 }
  0x59   :  { %v113_v24 = vmul.f32 %v164_v6, %v111_v18  ;;  %v90_v25 = vsel %vm88_vm3, %v89_v13, %v87_v22  ;;  %v112_v26 = vsub.f32 2.0, %v110_v20 }
  0x5a   :  { %v99_v27 = vmul.f32 2.0, %v91_v21  ;;  %v92_v28 = vmul.f32 3.0, %v90_v25  ;;  %vm95_vm4 = vcmp.lt.f32.partialorder %v75_v23, %v91_v21 }
  0x5b   :  { %v115_v29 = vmul.f32 %v113_v24, %v65_v0  ;;  %v114_v31 = vmul.f32 %v168_v14, %v112_v26 }
  0x5c   :  { %v100_v32 = vmul.f32 2.0, %v92_v28  ;;  %v101_v34 = vmul.f32 %v99_v27, %v75_v23  ;;  %vm96_vm5 = vcmp.lt.f32.partialorder %v76_v30, %v92_v28 }
  0x5d   :  { %v117_v35 = vsub.f32 2.0, %v115_v29  ;;  %v116_v36 = vmul.f32 %v114_v31, %v66_v1 }
  0x5e   :  { %v102_v40 = vmul.f32 %v100_v32, %v76_v30  ;;  %v103_v44 = vsub.f32 %v101_v34, %v93_v33 }
  0x5f   :  { %v119_v38 = vmul.f32 %v117_v35, %v113_v24  ;;  %v118_v41 = vsub.f32 2.0, %v116_v36 }
  0x60   :  { %v104_v48 = vsub.f32 %v102_v40, %v94_v39  ;;  %v105_v50 = vsel %vm95_vm4, %v97_v43, %v103_v44 }
  0x61   :  { %v125_v45 = vmul.f32 %v119_v38, %v67_v37  ;;  %v120_v46 = vmul.f32 %v118_v41, %v114_v31  ;;  %v121_v52 = vadd.f32 %v105_v50, %v67_v37 }
  0x62   :  { %v106_v51 = vsel %vm96_vm5, %v98_v47, %v104_v48 }
  0x63   :  { %169 = vlog2.f32 %v125_v45  ;;  %v126_v49 = vmul.f32 %v120_v46, %v68_v42  ;;  %v122_v53 = vadd.f32 %v106_v51, %v68_v42  ;;  %v123_v54 = vmul.f32 %v121_v52, %v119_v38 }
  0x65   :  { %171 = vlog2.f32 %v126_v49  ;;  %v124_v57 = vmul.f32 %v122_v53, %v120_v46 }
  0x6d   :  { %v170_v55 = vpop.eup %169 }
  0x6e   :  { %v128_v56 = vmul.f32 0.6931472, %v170_v55 }
  0x6f   :  { %v172_v58 = vpop.eup %171 }
  0x70   :  { %v131_v59 = vsub.f32 %v123_v54, %v128_v56  ;;  %v130_v60 = vmul.f32 0.6931472, %v172_v58 }
  0x72   :  { %v154_v61 = vadd.f32 -1.0, %v131_v59  ;;  %v132_v62 = vsub.f32 %v124_v57, %v130_v60 }
  0x74   :  { %135 = vst [vmem:[#allocation10] sm:$0xff] %v154_v61  ;;  %v155_v63 = vadd.f32 -1.0, %v132_v62 }
  0x76   :  { %136 = vst [vmem:[#allocation10 + $0x8] sm:$0xff] %v155_v63 }
  0x77   :  { %272 = shalt.err (!%p269_p8)
}
  0x78   :  { %s273_s11 = scalar_lea.hbm %s385_s4, 256 }
  0x79   :  { %p274_p9 = scmp.ne.s32.totalorder %s385_s4, %s273_s11  ;;  %p277_p10 = scmp.lt.u32.totalorder %s273_s11, %s385_s4 }
  0x7b   :  { %p279_p11 = pnand %p277_p10, %p274_p9 }
  0x7d   :  { %282 = shalt.err (!%p279_p11)
}
  0x7e   :  { %146 = dma.vmem_to_hbm [thread:$0]  %s144_s8, 256, %s385_s4, [#allocation4]  }
  0x7f   :  { %289 = dma.done.wait [#allocation4], 256  }
  0x80   :  { %290 = vsyncadd [#allocation4], 4294967040 }
  0x81   :  { %150 = vsyncpa [#allocation3], 1 }
  0x82   :  { %151 = vsyncpa [#allocation6], 1 }
  0x83   :  { %152 = vsyncpa [#allocation9], 1 }
  0x84   :  { %153 = vsyncpa [#allocation4], 1 }

</bundles_post_ra>
